<compile_context>
chip_gen: v7x
topology: tpu7x:2x2x1
jax: 0.10.0
libtpu: 0.0.40
codegen_flags: <defaults>
</compile_context>

<pallas_src>
import functools

import jax
import jax.numpy as jnp
from jax.experimental import pallas as pl
from jax.experimental.pallas import tpu as pltpu

IGNORE_INDEX = 255


def _round_up(x, m):
    return ((x + m - 1) // m) * m


def _ce_kernel(logits_ref, tgt_ref, loss_ref, cnt_ref, *,
               hw, tp, chunk, tiles_per_outer, needs_mask):
    """One grid step = one (image, outer pixel-chunk, pixel-tile).

    logits_ref: (1, C, tp)  native-layout logits (classes on sublanes)
    tgt_ref:    (1, 1, tp)  integer labels (lane-dense, any int dtype)
    loss_ref / cnt_ref: (1, 1, 1, 1) f32 per-(image, outer-chunk) partial sums,
        resident across the innermost ("arbitrary") pixel-tile axis.
    """
    o = pl.program_id(1)
    j = pl.program_id(2)

    @pl.when(j == 0)
    def _():
        loss_ref[...] = jnp.zeros_like(loss_ref)
        cnt_ref[...] = jnp.zeros_like(cnt_ref)

    # Global pixel offset of this block.  Intentionally UNCLAMPED: when the
    # index_map clamps an overhanging block to the last real tile, every lane
    # here maps to a position >= hw and is masked out below (no double count).
    block_start = (o * tiles_per_outer + j) * tp

    c = logits_ref.shape[1]
    n_chunks = tp // chunk

    # Loop-invariant iotas hoisted out of the chunk loop (JAX does not CSE
    # broadcast_in_dim inside the loop body).
    cls = jax.lax.broadcasted_iota(jnp.int32, (c, chunk), 0)
    lane = jax.lax.broadcasted_iota(jnp.int32, (1, chunk), 1) if needs_mask else None

    def body(k, carry):
        loss_p, cnt_p = carry
        off = pl.multiple_of(k * chunk, chunk)
        x = logits_ref[0, :, pl.ds(off, chunk)].astype(jnp.float32)   # (C, ck)
        t = tgt_ref[0, :, pl.ds(off, chunk)].astype(jnp.int32)        # (1, ck)

        # numerically stable log-sum-exp over the (small) class/sublane axis
        m = jnp.max(x, axis=0, keepdims=True)                          # (1, ck)
        lse = m + jnp.log(jnp.sum(jnp.exp(x - m), axis=0, keepdims=True))

        # logit of the target class: select (no one-hot matmul) + sublane sum
        picked = jnp.sum(jnp.where(cls == t, x, 0.0), axis=0, keepdims=True)

        valid = t != IGNORE_INDEX
        if needs_mask:
            valid = valid & ((block_start + off + lane) < hw)

        loss_p = loss_p + jnp.sum(jnp.where(valid, lse - picked, 0.0),
                                  keepdims=True)
        cnt_p = cnt_p + jnp.sum(valid.astype(jnp.float32), keepdims=True)
        return loss_p, cnt_p

    zero = jnp.zeros((1, 1), jnp.float32)
    loss_p, cnt_p = jax.lax.fori_loop(0, n_chunks, body, (zero, zero))

    # per-step scalar accumulation into the resident (1,1,1,1) output blocks
    loss_ref[...] += loss_p.reshape(loss_ref.shape)
    cnt_ref[...] += cnt_p.reshape(cnt_ref.shape)


@functools.partial(jax.jit, static_argnames=("tile_p",))
def cross_entropy_loss_2d(output, target, tile_p=262144):
    """output: (N, C, H, W) float logits; target: (N, H, W) integer labels."""
    n, c, h, w = output.shape
    hw = h * w

    # Native layout only (free reshapes, nothing materialized in HBM):
    # classes on sublanes, pixels on lanes.
    logits = output.reshape(n, c, hw)
    tgt = target.reshape(n, 1, hw)
    if (not jnp.issubdtype(tgt.dtype, jnp.integer)
            or jnp.dtype(tgt.dtype).itemsize > 4):
        tgt = tgt.astype(jnp.int32)     # narrow int dtypes pass through as-is

    # ---- generation-aware VMEM budget using sublane-PADDED block sizes ------
    itemsize = jnp.dtype(output.dtype).itemsize
    packing = max(1, 4 // itemsize)                  # values per 32-bit word
    c_pad = _round_up(c, 8 * packing)                # f32 -> mult of 8, bf16 -> 16
    logits_lane_bytes = c_pad * itemsize             # bytes per lane column
    tgt_lane_bytes = 32                              # (1, tp) pads to 8 x 32-bit

    try:
        vmem_cap = int(pltpu.get_tpu_info().vmem_capacity_bytes)
    except Exception:                                # pragma: no cover
        vmem_cap = 64 * 1024 * 1024                  # v7x per-TC (most constrained)
    budget = min(int(vmem_cap * 0.70), 48 * 1024 * 1024)   # total kernel footprint
    vmem_limit = int(min(vmem_cap * 0.85, 100 * 1024 * 1024))

    # 2x = double buffering of each input block.
    tp_cap = max(128, budget // (2 * (logits_lane_bytes + tgt_lane_bytes)))

    # ---- pixel tile: big DMA blocks, NO wrapper-side padding ----------------
    if hw < 128:
        tp, chunk = hw, hw            # full-extent lane block (allowed by rule)
    else:
        tp = min(tile_p, tp_cap, _round_up(hw, 128))
        tp = max(128, (tp // 128) * 128)
        chunk = min(1024, tp)         # strip-mine compute -> bounded vreg use
        tp = (tp // chunk) * chunk

    num_tiles = -(-hw // tp)          # last tile may overhang; masked in-kernel
    n_outer = 2 if num_tiles >= 2 else 1        # megacore work even at N=1
    tiles_per_outer = -(-num_tiles // n_outer)
    needs_mask = (n_outer * tiles_per_outer * tp) != hw
    last_tile = num_tiles - 1

    def x_map(i, o, j):
        # clamp overhanging (o, j) steps onto the last real tile; the in-kernel
        # position mask zeroes their contribution, so nothing is double counted.
        return (i, 0, jnp.minimum(o * tiles_per_outer + j, last_tile))

    kernel = functools.partial(
        _ce_kernel, hw=hw, tp=tp, chunk=chunk,
        tiles_per_outer=tiles_per_outer, needs_mask=needs_mask)

    loss_parts, cnt_parts = pl.pallas_call(
        kernel,
        out_shape=(
            jax.ShapeDtypeStruct((n, n_outer, 1, 1), jnp.float32),
            jax.ShapeDtypeStruct((n, n_outer, 1, 1), jnp.float32),
        ),
        grid_spec=pltpu.PrefetchScalarGridSpec(
            num_scalar_prefetch=0,
            grid=(n, n_outer, tiles_per_outer),
            in_specs=[
                pl.BlockSpec((1, c, tp), x_map),
                pl.BlockSpec((1, 1, tp), x_map),
            ],
            out_specs=[
                pl.BlockSpec((1, 1, 1, 1), lambda i, o, j: (i, o, 0, 0)),
                pl.BlockSpec((1, 1, 1, 1), lambda i, o, j: (i, o, 0, 0)),
            ],
        ),
        compiler_params=pltpu.CompilerParams(
            # per-(image, chunk) partial outputs -> both leading axes 'parallel'
            # (keeps both v7x TensorCores streaming even for N=1); the inner
            # pixel-tile axis is the reduction -> 'arbitrary', innermost.
            dimension_semantics=("parallel", "parallel", "arbitrary"),
            vmem_limit_bytes=vmem_limit,
        ),
    )(logits, tgt)

    # reduction='mean', weight=None: sum of per-pixel NLL / #non-ignored pixels
    # TODO(synk): per-class `weight` tensor not implemented (module default is None).
    return (jnp.sum(loss_parts) / jnp.sum(cnt_parts)).astype(jnp.float32)


def _reference(output, target):
    # pure-JAX reference (same semantics as torch.nn.CrossEntropyLoss)
    n, c, h, w = output.shape
    logits = jnp.transpose(output, (0, 2, 3, 1)).reshape(-1, c).astype(jnp.float32)
    tgt = target.reshape(-1).astype(jnp.int32)
    valid = tgt != IGNORE_INDEX
    safe_t = jnp.where(valid, tgt, 0)
    logz = jax.nn.logsumexp(logits, axis=-1)
    picked = jnp.take_along_axis(logits, safe_t[:, None], axis=-1)[:, 0]
    nll = jnp.where(valid, logz - picked, 0.0)
    return jnp.sum(nll) / jnp.sum(valid.astype(jnp.float32))


if __name__ == "__main__":
    # Test 1: canonical small shape (single tile per image).
    key = jax.random.PRNGKey(0)
    k1, k2, k3 = jax.random.split(key, 3)
    N, C, H, W = 2, 4, 16, 16
    output = jax.random.normal(k1, (N, C, H, W), dtype=jnp.float32)
    target = jax.random.randint(k2, (N, H, W), 0, C, dtype=jnp.int32)
    ignore_mask = jax.random.uniform(k3, (N, H, W)) < 0.1
    target = jnp.where(ignore_mask, IGNORE_INDEX, target)

    loss = cross_entropy_loss_2d(output, target)
    jax.block_until_ready(loss)
    ref = _reference(output, target)
    assert jnp.allclose(loss, ref, atol=1e-4, rtol=1e-5), (loss, ref)

    # Test 2: ragged spatial size (23x23) + tiny tile to exercise the in-kernel
    # tail mask, multi-tile accumulation, and the 2-way pixel-chunk split
    # (including the clamped overhanging step).
    k4, k5, k6 = jax.random.split(jax.random.PRNGKey(1), 3)
    N2, C2, H2, W2 = 1, 3, 23, 23
    out2 = jax.random.normal(k4, (N2, C2, H2, W2), dtype=jnp.float32)
    tgt2 = jax.random.randint(k5, (N2, H2, W2), 0, C2, dtype=jnp.int32)
    tgt2 = jnp.where(jax.random.uniform(k6, (N2, H2, W2)) < 0.1, IGNORE_INDEX, tgt2)

    loss2 = cross_entropy_loss_2d(out2, tgt2, tile_p=128)
    jax.block_until_ready(loss2)
    ref2 = _reference(out2, tgt2)
    assert jnp.allclose(loss2, ref2, atol=1e-4, rtol=1e-5), (loss2, ref2)

    print("KERNEL_OK")
</pallas_src>

<mosaic_0001>
module attributes {stable_mosaic.version = 11 : i64} {
  func.func @_ce_kernel(%arg0: i32, %arg1: i32, %arg2: i32, %arg3: memref<1x4x256xf32, #tpu.memory_space<vmem>>, %arg4: memref<1x1x256xi32, #tpu.memory_space<vmem>>, %arg5: memref<1x1x1x1xf32, #tpu.memory_space<vmem>>, %arg6: memref<1x1x1x1xf32, #tpu.memory_space<vmem>>) attributes {dimension_semantics = [#tpu.dimension_semantics<parallel>, #tpu.dimension_semantics<parallel>, #tpu.dimension_semantics<arbitrary>], iteration_bounds = array<i64: 2, 1, 1>, scalar_prefetch = 0 : i64, scratch_operands = 0 : i64, tpu.core_type = #tpu.core_type<tc>, window_params = [{transform_indices = @transform_0, window_bounds = array<i64: 1, 4, 256>}, {transform_indices = @transform_1, window_bounds = array<i64: 1, 1, 256>}, {transform_indices = @transform_2, window_bounds = array<i64: 1, 1, 1, 1>}, {transform_indices = @transform_3, window_bounds = array<i64: 1, 1, 1, 1>}]} {
    %c0_i32 = arith.constant 0 : i32
    %0 = arith.cmpi eq, %arg2, %c0_i32 : i32
    %1 = arith.extui %0 : i1 to i32
    %c0_i32_0 = arith.constant 0 : i32
    %2 = arith.cmpi ne, %1, %c0_i32_0 : i32
    scf.if %2 {
      %cst_28 = arith.constant 0.000000e+00 : f32
      %55 = vector.broadcast %cst_28 : f32 to vector<1x1x1x1xf32>
      %c0_29 = arith.constant 0 : index
      %c0_30 = arith.constant 0 : index
      %c0_31 = arith.constant 0 : index
      %c0_32 = arith.constant 0 : index
      %56 = vector.load %arg5[%c0_29, %c0_30, %c0_31, %c0_32] : memref<1x1x1x1xf32, #tpu.memory_space<vmem>>, vector<1x1x1x1xf32>
      tpu.vector_store %arg5[%c0_29, %c0_30, %c0_31, %c0_32], %55 {strides = array<i32>} : memref<1x1x1x1xf32, #tpu.memory_space<vmem>>, vector<1x1x1x1xf32>,
      %cst_33 = arith.constant 0.000000e+00 : f32
      %57 = vector.broadcast %cst_33 : f32 to vector<1x1x1x1xf32>
      %c0_34 = arith.constant 0 : index
      %c0_35 = arith.constant 0 : index
      %c0_36 = arith.constant 0 : index
      %c0_37 = arith.constant 0 : index
      %58 = vector.load %arg6[%c0_34, %c0_35, %c0_36, %c0_37] : memref<1x1x1x1xf32, #tpu.memory_space<vmem>>, vector<1x1x1x1xf32>
      tpu.vector_store %arg6[%c0_34, %c0_35, %c0_36, %c0_37], %57 {strides = array<i32>} : memref<1x1x1x1xf32, #tpu.memory_space<vmem>>, vector<1x1x1x1xf32>,
    } else {
    }
    %3 = tpu.iota {dimensions = array<i32: 0>} : vector<4x256xi32>
    %cst = arith.constant 0.000000e+00 : f32
    %4 = vector.broadcast %cst : f32 to vector<1x1xf32>
    %c0_i32_1 = arith.constant 0 : i32
    %c256_i32 = arith.constant 256 : i32
    %5 = arith.muli %c0_i32_1, %c256_i32 : i32
    %6 = tpu.assume_multiple %5, 256 : i32
    %c0 = arith.constant 0 : index
    %c0_2 = arith.constant 0 : index
    %7 = arith.index_cast %6 : i32 to index
    %8 = vector.load %arg3[%c0, %c0_2, %7] : memref<1x4x256xf32, #tpu.memory_space<vmem>>, vector<1x4x256xf32>
    %9 = vector.shape_cast %8 : vector<1x4x256xf32> to vector<4x256xf32>
    %c0_3 = arith.constant 0 : index
    %c0_4 = arith.constant 0 : index
    %10 = arith.index_cast %6 : i32 to index
    %11 = vector.load %arg4[%c0_3, %c0_4, %10] : memref<1x1x256xi32, #tpu.memory_space<vmem>>, vector<1x1x256xi32>
    %12 = vector.shape_cast %11 : vector<1x1x256xi32> to vector<1x256xi32>
    %cst_5 = arith.constant dense<0xFF800000> : vector<256xf32>
    %13 = vector.multi_reduction <maximumf>, %9, %cst_5 [0] : vector<4x256xf32> to vector<256xf32>
    %14 = vector.shape_cast %13 : vector<256xf32> to vector<1x256xf32>
    %15 = vector.broadcast %14 : vector<1x256xf32> to vector<4x256xf32>
    %16 = arith.subf %9, %15 : vector<4x256xf32>
    %17 = math.exp %16 : vector<4x256xf32>
    %cst_6 = arith.constant dense<0.000000e+00> : vector<256xf32>
    %18 = vector.multi_reduction <add>, %17, %cst_6 [0] : vector<4x256xf32> to vector<256xf32>
    %19 = vector.shape_cast %18 : vector<256xf32> to vector<1x256xf32>
    %20 = math.log %19 : vector<1x256xf32>
    %21 = arith.addf %14, %20 : vector<1x256xf32>
    %22 = vector.broadcast %12 : vector<1x256xi32> to vector<4x256xi32>
    %23 = arith.cmpi eq, %3, %22 : vector<4x256xi32>
    %cst_7 = arith.constant 0.000000e+00 : f32
    %24 = vector.broadcast %cst_7 : f32 to vector<4x256xf32>
    %25 = arith.select %23, %9, %24 : vector<4x256xi1>, vector<4x256xf32>
    %cst_8 = arith.constant dense<0.000000e+00> : vector<256xf32>
    %26 = vector.multi_reduction <add>, %25, %cst_8 [0] : vector<4x256xf32> to vector<256xf32>
    %27 = vector.shape_cast %26 : vector<256xf32> to vector<1x256xf32>
    %c255_i32 = arith.constant 255 : i32
    %28 = vector.broadcast %c255_i32 : i32 to vector<1x256xi32>
    %29 = arith.cmpi ne, %12, %28 : vector<1x256xi32>
    %30 = arith.subf %21, %27 : vector<1x256xf32>
    %cst_9 = arith.constant 0.000000e+00 : f32
    %31 = vector.broadcast %cst_9 : f32 to vector<1x256xf32>
    %32 = arith.select %29, %30, %31 : vector<1x256xi1>, vector<1x256xf32>
    %33 = vector.shape_cast %32 : vector<1x256xf32> to vector<1x1x256xf32>
    %cst_10 = arith.constant dense<0.000000e+00> : vector<1xf32>
    %34 = vector.multi_reduction <add>, %33, %cst_10 [1, 2] : vector<1x1x256xf32> to vector<1xf32>
    %35 = vector.shape_cast %34 : vector<1xf32> to vector<1x1x1xf32>
    %36 = vector.extract %35[0, 0, 0] : f32 from vector<1x1x1xf32>
    %37 = vector.broadcast %36 : f32 to vector<1x1xf32>
    %38 = arith.addf %4, %37 : vector<1x1xf32>
    %39 = arith.extui %29 : vector<1x256xi1> to vector<1x256xi32>
    %40 = arith.sitofp %39 : vector<1x256xi32> to vector<1x256xf32>
    %41 = vector.shape_cast %40 : vector<1x256xf32> to vector<1x1x256xf32>
    %cst_11 = arith.constant dense<0.000000e+00> : vector<1xf32>
    %42 = vector.multi_reduction <add>, %41, %cst_11 [1, 2] : vector<1x1x256xf32> to vector<1xf32>
    %43 = vector.shape_cast %42 : vector<1xf32> to vector<1x1x1xf32>
    %44 = vector.extract %43[0, 0, 0] : f32 from vector<1x1x1xf32>
    %45 = vector.broadcast %44 : f32 to vector<1x1xf32>
    %46 = arith.addf %4, %45 : vector<1x1xf32>
    %c1_i32 = arith.constant 1 : i32
    %c0_12 = arith.constant 0 : index
    %c0_13 = arith.constant 0 : index
    %c0_14 = arith.constant 0 : index
    %c0_15 = arith.constant 0 : index
    %47 = vector.load %arg5[%c0_12, %c0_13, %c0_14, %c0_15] : memref<1x1x1x1xf32, #tpu.memory_space<vmem>>, vector<1x1x1x1xf32>
    %48 = vector.shape_cast %38 : vector<1x1xf32> to vector<1x1x1x1xf32>
    %49 = arith.addf %47, %48 : vector<1x1x1x1xf32>
    %c0_16 = arith.constant 0 : index
    %c0_17 = arith.constant 0 : index
    %c0_18 = arith.constant 0 : index
    %c0_19 = arith.constant 0 : index
    %50 = vector.load %arg5[%c0_16, %c0_17, %c0_18, %c0_19] : memref<1x1x1x1xf32, #tpu.memory_space<vmem>>, vector<1x1x1x1xf32>
    tpu.vector_store %arg5[%c0_16, %c0_17, %c0_18, %c0_19], %49 {strides = array<i32>} : memref<1x1x1x1xf32, #tpu.memory_space<vmem>>, vector<1x1x1x1xf32>,
    %c0_20 = arith.constant 0 : index
    %c0_21 = arith.constant 0 : index
    %c0_22 = arith.constant 0 : index
    %c0_23 = arith.constant 0 : index
    %51 = vector.load %arg6[%c0_20, %c0_21, %c0_22, %c0_23] : memref<1x1x1x1xf32, #tpu.memory_space<vmem>>, vector<1x1x1x1xf32>
    %52 = vector.shape_cast %46 : vector<1x1xf32> to vector<1x1x1x1xf32>
    %53 = arith.addf %51, %52 : vector<1x1x1x1xf32>
    %c0_24 = arith.constant 0 : index
    %c0_25 = arith.constant 0 : index
    %c0_26 = arith.constant 0 : index
    %c0_27 = arith.constant 0 : index
    %54 = vector.load %arg6[%c0_24, %c0_25, %c0_26, %c0_27] : memref<1x1x1x1xf32, #tpu.memory_space<vmem>>, vector<1x1x1x1xf32>
    tpu.vector_store %arg6[%c0_24, %c0_25, %c0_26, %c0_27], %53 {strides = array<i32>} : memref<1x1x1x1xf32, #tpu.memory_space<vmem>>, vector<1x1x1x1xf32>,
    return
  }
  func.func @transform_0(%arg0: i32, %arg1: i32, %arg2: i32) -> (i32, i32, i32) {
    %c1_i32 = arith.constant 1 : i32
    %0 = arith.muli %arg1, %c1_i32 : i32
    %1 = arith.addi %0, %arg2 : i32
    %c0_i32 = arith.constant 0 : i32
    %2 = arith.minsi %1, %c0_i32 : i32
    %c0_i32_0 = arith.constant 0 : i32
    %c0_i32_1 = arith.constant 0 : i32
    return %arg0, %c0_i32_0, %2 : i32, i32, i32
  }
  func.func @transform_1(%arg0: i32, %arg1: i32, %arg2: i32) -> (i32, i32, i32) {
    %c1_i32 = arith.constant 1 : i32
    %0 = arith.muli %arg1, %c1_i32 : i32
    %1 = arith.addi %0, %arg2 : i32
    %c0_i32 = arith.constant 0 : i32
    %2 = arith.minsi %1, %c0_i32 : i32
    %c0_i32_0 = arith.constant 0 : i32
    %c0_i32_1 = arith.constant 0 : i32
    return %arg0, %c0_i32_0, %2 : i32, i32, i32
  }
  func.func @transform_2(%arg0: i32, %arg1: i32, %arg2: i32) -> (i32, i32, i32, i32) {
    %c0_i32 = arith.constant 0 : i32
    %c0_i32_0 = arith.constant 0 : i32
    %c0_i32_1 = arith.constant 0 : i32
    return %arg0, %arg1, %c0_i32, %c0_i32_0 : i32, i32, i32, i32
  }
  func.func @transform_3(%arg0: i32, %arg1: i32, %arg2: i32) -> (i32, i32, i32, i32) {
    %c0_i32 = arith.constant 0 : i32
    %c0_i32_0 = arith.constant 0 : i32
    %c0_i32_1 = arith.constant 0 : i32
    return %arg0, %arg1, %c0_i32, %c0_i32_0 : i32, i32, i32, i32
  }
}

</mosaic_0001>

<bundles_post_ra>
// kernel: cross_entropy_loss_2d.1
= control target key start
LH: loop header
LB: loop body
LE: loop exit
PB: predicated region body
PF: predicated region fallthrough
CT: control target
= control target key end

     0   :  { %s688_s12 = smov 0   ;;  %s690_s13 = smov 0   ;;  %s753_s0 = inlined_call_operand.vmem [shape: f32[2,4,256], index: 0, kind: input, shape index: {}]   ;;  %s754_s1 = inlined_call_operand.vmem [shape: s32[2,1,256], index: 1, kind: input, shape index: {}]   ;;  %s755_s2 = inlined_call_operand.vmem [shape: f32[2,1,1,1], index: 2, kind: output, shape index: {0}]   ;;  %s756_s3 = inlined_call_operand.vmem [shape: f32[2,1,1,1], index: 3, kind: output, shape index: {1}]  }
   0x1   :  { %s692_s14 = smov 0  }
   0x2 LB: > { %s33_s15 = sadd.s32 1, %s660_s13  ;;  %p597_p0 = scmp.ge.s32.totalorder %s664_s14, 1  ;;  %s664_s14 = sphi %s692_s14, %s14_s14   ;;  %s660_s13 = sphi %s690_s13, %s758_s13   ;;  %s656_s12 = sphi %s688_s12, %s757_s12  }
   0x3   : > { %p35_p1 = scmp.ge.s32.totalorder %s33_s15, 2  ;;  %p210_p2 = scmp.lt.s32.totalorder %s664_s14, 3 }
   0x5   : > { %s760_s15 = smov (%p35_p1, %s33_s15), 0  ;;  %p211_p3 = pnand %p597_p0, %p210_p2 }
   0x6   : > { %p263_p4 = scmp.lt.s32.totalorder (!%p211_p3), %s656_s12, 1  ;;  %vm316_vm0 = vcmask (!%p211_p3), 1043456   ;;  %v309_v13 = vlaneseq (!%p211_p3)  ;;  %v666_v56 = vmov (!%p211_p3), 1966171168   ;;  %vm420_vm4 = vcmask (!%p211_p3), 1040384  }
   0x7   : > { %214 = sbr.rel (%p211_p3) target bundleno = 306 (0x132), region = 28  ;;  %v394_v57 = vunpack.c.l.s4 (!%p211_p3), %v666_v56  ;;  %vm306_vm5 = vcmask (!%p211_p3), 0  }
   0x8   : > { %v310_v17 = vshrl.u32 (!%p211_p3), %v309_v13, 7 }
   0xa   : > { %v718_v21 = vsub.s32 (!%p211_p3), 0, %v310_v17  ;;  %v720_v23 = vsub.s32 (!%p211_p3), 1, %v310_v17 }
   0xe   : > { %s762_s12 = smov (!%p263_p4, %s656_s12), 1 }
   0xf   : > { %s604_s16 = sshll.u32 %s762_s12, 3  ;;  %s600_s20 = sshll.u32 %s762_s12, 1 }
  0x10   : > { %s270_s19 = scalar_lea.vmem %s753_s0, %s604_s16  ;;  %s285_s23 = scalar_lea.vmem %s754_s1, %s600_s20 }
  0x11   : > { %v311_v0 = vld [vmem:[%s270_s19] sm:$0xff]  ;;  %s295_s26 = scalar_lea.vmem %s755_s2, %s762_s12  ;;  %s301_s29 = scalar_lea.vmem %s756_s3, %s762_s12 }
  0x12   : > { %v314_v1 = vcombine.high %v311_v0, %v311_v0  ;;  %v317_v2 = vsel %vm316_vm0, %v311_v0, -inf  ;;  %v312_v22 = vld [vmem:[%s285_s23] sm:$0x3] }
  0x13   : > { %v318_v3 = vrot.slane %v317_v2, 4  ;;  %v364_v24 = vrot.slane %v312_v22, %v718_v21  ;;  %v368_v25 = vrot.slane %v312_v22, %v720_v23  ;;  %vm387_vm3 = vcmp.ne.s32.totalorder %v312_v22, 255 }
  0x14   : > { %v324_v4 = vsel %vm316_vm0, %v314_v1, -inf }
  0x15   : > { %v319_v5 = vmax.f32 %v317_v2, %v318_v3  ;;  %v325_v6 = vrot.slane %v324_v4, 4  ;;  %vm369_vm1 = vcmp.eq.s32.totalorder %v310_v17, %v364_v24  ;;  %vm370_vm2 = vcmp.eq.s32.totalorder %v310_v17, %v368_v25 }
  0x16   : > { %v371_v26 = vsel %vm369_vm1, %v311_v0, 0.0  ;;  %v372_v30 = vsel %vm370_vm2, %v314_v1, 0.0  ;;  %v395_v1 = vunpack.c.0.s8 %v394_v57 }
  0x17   : > { %v320_v7 = vrot.slane %v319_v5, 2  ;;  %v326_v8 = vmax.f32 %v324_v4, %v325_v6  ;;  %v373_v32 = vsel %vm316_vm0, %v371_v26, 0.0  ;;  %v380_v36 = vsel %vm316_vm0, %v372_v30, 0.0 }
  0x18   : > { %v374_v37 = vrot.slane %v373_v32, 4  ;;  %v381_v40 = vrot.slane %v380_v36, 4 }
  0x19   : > { %v321_v9 = vmax.f32 %v319_v5, %v320_v7  ;;  %v327_v10 = vrot.slane %v326_v8, 2  ;;  %v398_v5 = vsub.s32 %v395_v1, %v310_v17 }
  0x1a   : > { %v375_v43 = vadd.f32 %v374_v37, %v373_v32  ;;  %v382_v46 = vadd.f32 %v381_v40, %v380_v36 }
  0x1b   : > { %v322_v11 = vrot.slane %v321_v9, 1  ;;  %v328_v12 = vmax.f32 %v326_v8, %v327_v10  ;;  %v667_v8 = vmov 0.0  }
  0x1c   : > { %v376_v49 = vrot.slane %v375_v43, 2  ;;  %v383_v51 = vrot.slane %v382_v46, 2  ;;  %307 = vst.msk [vmem:[%s295_s26] sm:$0x1] %vm306_vm5, %v667_v8  ;;  %308 = vst.msk [vmem:[%s301_s29] sm:$0x1] %vm306_vm5, %v667_v8 }
  0x1d   : > { %v323_v14 = vmax.f32 %v321_v9, %v322_v11  ;;  %v329_v15 = vrot.slane %v328_v12, 1  ;;  %v601_v9 = vsel %vm387_vm3, 1.0, %v667_v8 }
  0x1e   : > { %v377_v52 = vadd.f32 %v376_v49, %v375_v43  ;;  %v384_v53 = vadd.f32 %v383_v51, %v382_v46  ;;  %v441_v11 = vrot.slane %v601_v9, %v718_v21 }
  0x1f   : > { %v330_v16 = vmax.f32 %v328_v12, %v329_v15  ;;  %v445_v12 = vrot.slane %v601_v9, %v720_v23 }
  0x20   : > { %v378_v54 = vrot.slane %v377_v52, 1  ;;  %v385_v55 = vrot.slane %v384_v53, 1 }
  0x21   : > { %v333_v18 = vcombine.low %v323_v14, %v330_v16 }
  0x22   : > { %v379_v60 = vadd.f32 %v378_v54, %v377_v52 }
  0x23   : > { %v335_v19 = vsub.f32 %v311_v0, %v333_v18  ;;  %v386_v0 = vadd.f32 %v385_v55, %v384_v53  ;;  %v448_v18 = vsel %vm420_vm4, %v441_v11, 0.0  ;;  %v462_v36 = vld [vmem:[%s295_s26] sm:$0x1] }
  0x25   : > { %v336_v20 = vmul.f32 1.442695, %v335_v19  ;;  %v449_v19 = vsel %vm420_vm4, %v445_v12, 0.0 }
  0x26   : > { %v450_v22 = vadd.f32 %v449_v19, %v448_v18 }
  0x27   : > { %636 = vpow2.f32 %v336_v20 }
  0x31   : > { %v637_v27 = vpop.eup %636 }
  0x32   : > { %v339_v28 = vcombine.high %v637_v27, %v637_v27  ;;  %v341_v29 = vsel %vm316_vm0, %v637_v27, 0.0 }
  0x33   : > { %v342_v31 = vrot.slane %v341_v29, 4 }
  0x34   : > { %v348_v33 = vsel %vm316_vm0, %v339_v28, 0.0 }
  0x35   : > { %v343_v34 = vadd.f32 %v342_v31, %v341_v29  ;;  %v349_v35 = vrot.slane %v348_v33, 4 }
  0x37   : > { %v344_v38 = vrot.slane %v343_v34, 2  ;;  %v350_v39 = vadd.f32 %v349_v35, %v348_v33 }
  0x39   : > { %v345_v41 = vadd.f32 %v344_v38, %v343_v34  ;;  %v351_v42 = vrot.slane %v350_v39, 2 }
  0x3b   : > { %v346_v44 = vrot.slane %v345_v41, 1  ;;  %v352_v45 = vadd.f32 %v351_v42, %v350_v39  ;;  %v466_v39 = vld [vmem:[%s301_s29] sm:$0x1] }
  0x3d   : > { %v347_v47 = vadd.f32 %v346_v44, %v345_v41  ;;  %v353_v48 = vrot.slane %v352_v45, 1 }
  0x3f   : > { %v354_v50 = vadd.f32 %v353_v48, %v352_v45  ;;  %638 = vlog2.f32 %v347_v47 }
  0x41   : > { %640 = vlog2.f32 %v354_v50 }
  0x49   : > { %v639_v58 = vpop.eup %638 }
  0x4a   : > { %v356_v59 = vmul.f32 0.6931472, %v639_v58 }
  0x4b   : > { %v641_v61 = vpop.eup %640 }
  0x4c   : > { %v358_v62 = vmul.f32 0.6931472, %v641_v61  ;;  %v359_v63 = vadd.f32 %v356_v59, %v323_v14 }
  0x4e   : > { %v360_v2 = vadd.f32 %v358_v62, %v330_v16  ;;  %v388_v3 = vsub.f32 %v359_v63, %v379_v60 }
  0x50   : > { %v389_v4 = vsub.f32 %v360_v2, %v386_v0 }
  0x52   : > { %v392_v6 = vcombine.low %v388_v3, %v389_v4 }
  0x54   : > { %v399_v7 = vrot.slane %v392_v6, %v398_v5 }
  0x56   : > { %v406_v10 = vrot.slane %v399_v7, %v398_v5 }
  0x58   : > { %v408_v13 = vsel %vm387_vm3, %v406_v10, 0.0 }
  0x59   : > { %v413_v14 = vrot.slane %v408_v13, %v718_v21  ;;  %v417_v15 = vrot.slane %v408_v13, %v720_v23 }
  0x5b   : > { %v421_v16 = vsel %vm420_vm4, %v413_v14, 0.0  ;;  %v422_v17 = vsel %vm420_vm4, %v417_v15, 0.0 }
  0x5c   : > { %v423_v20 = vadd.f32 %v422_v17, %v421_v16 }
  0x5e   : > { %424 = vadd.xlane.f32.xlu0 %v423_v20 }
  0x62   : > { %451 = vadd.xlane.f32.xlu0 %v450_v22 }
  0xeb   : > { %v425_v21 = vpop.xlane.xlu0 %424 }
  0xec   : > { %v426_v23 = vrot.slane %v425_v21, 4 }
  0xee   : > { %v427_v24 = vadd.f32 %v426_v23, %v425_v21 }
  0xef   : > { %v452_v25 = vpop.xlane.xlu0 %451 }
  0xf0   : > { %v428_v26 = vrot.slane %v427_v24, 2  ;;  %v453_v27 = vrot.slane %v452_v25, 4 }
  0xf2   : > { %v454_v28 = vadd.f32 %v453_v27, %v452_v25  ;;  %v429_v29 = vadd.f32 %v428_v26, %v427_v24 }
  0xf4   : > { %v455_v30 = vrot.slane %v454_v28, 2  ;;  %v430_v31 = vrot.slane %v429_v29, 1 }
  0xf6   : > { %v456_v32 = vadd.f32 %v455_v30, %v454_v28  ;;  %v431_v33 = vadd.f32 %v430_v31, %v429_v29 }
  0xf8   : > { %605 = vpush %v431_v33  ;;  %v457_v34 = vrot.slane %v456_v32, 1 }
  0xfa   : > { %v458_v35 = vadd.f32 %v457_v34, %v456_v32 }
  0xfc   : > { %607 = vpush %v458_v35 }
 0x129   : > { %s606_s30 = spop %605 }
 0x12a   : > { %v433_v37 = vstv %s606_s30 }
 0x12b   : > { %v463_v38 = vadd.f32 %v462_v36, %v433_v37 }
 0x12d   : > { %465 = vst.msk [vmem:[%s295_s26] sm:$0x1] %vm306_vm5, %v463_v38  ;;  %s608_s4 = spop %607 }
 0x12e   : > { %v460_v40 = vstv %s608_s4 }
 0x12f   : > { %v467_v41 = vadd.f32 %v466_v39, %v460_v40 }
 0x131   : > { %468 = vst.msk [vmem:[%s301_s29] sm:$0x1] %vm306_vm5, %v467_v41 }
 0x132 PF: > { %s14_s14 = sadd.s32 1, %s664_s14   ;;  %s757_s12 = smov %s660_s13 }
 0x133   : > { %p11_p5 = scmp.ge.s32.totalorder %s14_s14, 4   ;;  %s758_s13 = smov %s760_s15 }
 0x135   :  { %13 = sbr.rel (!%p11_p5) target bundleno = 2 (0x2), region = 77 }

</bundles_post_ra>
